<compile_context>
chip_gen: v7x
topology: tpu7x:2x2x1
jax: 0.10.0
libtpu: 0.0.40
codegen_flags: <defaults>
</compile_context>

<pallas_src>
import functools

import jax
import jax.numpy as jnp
from jax.experimental import pallas as pl
from jax.experimental.pallas import tpu as pltpu


def _encoder_kernel(x_ref, w_ref, b_ref, o_ref, *, inv_s):
    # x_ref: (TB, S, H) token embeddings (bf16) for one batch tile.
    # w_ref: (H, D)  projection weight (bf16); constant index_map -> VMEM-resident.
    # b_ref: (1, D)  bias (f32); constant index_map -> VMEM-resident.
    # o_ref: (TB, D) sentence encodings.
    #
    # Mean pool with f32 accumulation (v5e has no bf16 VALU) without requesting a
    # full f32 copy of the tile; 1/S is baked in as a compile-time constant.
    pooled = jnp.sum(x_ref[...], axis=1, dtype=jnp.float32) * inv_s       # (TB, H) f32
    # MXU matmul: bf16 operands, f32 accumulation — native rate on v5e/v6e/v7x.
    proj = jnp.dot(pooled.astype(w_ref.dtype), w_ref[...],
                   preferred_element_type=jnp.float32)                    # (TB, D) f32
    o_ref[...] = (proj + b_ref[...]).astype(o_ref.dtype)


def _vmem_capacity_bytes():
    """Generation-aware VMEM capacity; fall back to v7x's 64 MiB per-TC (the
    smallest of v5e/v6e/v7x) if the query is unavailable."""
    try:
        return int(pltpu.get_tpu_info().vmem_capacity_bytes)
    except Exception:  # pragma: no cover - query not available
        return 64 << 20


def _pick_batch_tile(n, s, h, d, in_itemsize, out_itemsize, vmem_budget):
    """Largest batch tile (multiple of 8, <=256) whose FULL VMEM footprint fits
    the budget: input double-buffer + output double-buffer + weight/bias
    (conservatively double-buffered) + the f32 pooling temp."""
    if n < 8:
        return max(1, n)                       # single full-array block

    fixed = 2 * (h * d * in_itemsize + d * 4)  # weight + bias, x2 to be safe
    per_row = (2 * s * h * in_itemsize         # input tile, double-buffered
               + 2 * d * out_itemsize          # output tile, double-buffered
               + s * h * 4                     # worst-case f32 pooling temp
               + h * 4)                        # pooled f32 row

    # MXU M-dim target: 256 rows (full width on v6e/v7x, 2x v5e's 128 MXU).
    cap = min(256, (n // 8) * 8)
    # For large batches keep >= 2 grid tiles (v7x dual-TC + pipeline overlap),
    # without dropping a tile below 128 rows.
    if n >= 256:
        cap = min(cap, max(128, ((n // 2) // 8) * 8))

    tb = 8
    while tb * 2 <= cap and fixed + (tb * 2) * per_row <= vmem_budget:
        tb *= 2
    return tb


def encode_batch(x, w, b, *, batch_tile=None, out_dtype=jnp.float32):
    """Pallas 'sentence encoder': mean-pool over seq, then linear projection.

    x: (B, S, H) token embeddings, w: (H, D), b: (1, D).  Returns (B, D).
    Set out_dtype=jnp.bfloat16 to halve output HBM traffic if downstream
    similarity math tolerates it.
    """
    B, S, H = x.shape
    D = w.shape[1]

    vmem_limit = int(_vmem_capacity_bytes() * 0.75)        # ~25% headroom
    tb = batch_tile or _pick_batch_tile(
        B, S, H, D, x.dtype.itemsize, jnp.dtype(out_dtype).itemsize, vmem_limit)

    kernel = functools.partial(_encoder_kernel, inv_s=1.0 / S)
    return pl.pallas_call(
        kernel,
        out_shape=jax.ShapeDtypeStruct((B, D), out_dtype),
        grid=(pl.cdiv(B, tb),),                            # ragged last block, no jnp.pad
        in_specs=[
            pl.BlockSpec((tb, S, H), lambda i: (i, 0, 0)),  # batch-tiled, pipelined
            pl.BlockSpec((H, D), lambda i: (0, 0)),         # weight resident across grid
            pl.BlockSpec((1, D), lambda i: (0, 0)),         # bias resident across grid
        ],
        out_specs=pl.BlockSpec((tb, D), lambda i: (i, 0)),  # lane-dense (D % 128 == 0)
        compiler_params=pltpu.CompilerParams(
            dimension_semantics=("parallel",),              # shard batch tiles across TCs (v7x)
            vmem_limit_bytes=vmem_limit,
        ),
    )(x, w, b)


def simplified_pairwise_forward(context_x, target_x, w, b, *, out_dtype=jnp.float32):
    """Mirrors SimplifiedPairwise.forward: returns (context_encodings, target_encodings).

    Two independent pallas_calls (no jnp.concatenate): the fusion only saved one
    small weight DMA while costing a full HBM round-trip of the activations.
    """
    # TODO(synk): context utterance joining / tokenization are Python string ops
    #             with no tensor equivalent; inputs are pre-embedded tokens.
    target_encodings = encode_batch(target_x, w, b, out_dtype=out_dtype)
    context_encodings = encode_batch(context_x, w, b, out_dtype=out_dtype)
    return context_encodings, target_encodings


if __name__ == "__main__":
    key = jax.random.PRNGKey(0)
    k_ctx, k_tgt, k_w, k_b = jax.random.split(key, 4)

    # Small but hardware-aligned: H, D on 128-lane boundaries.  B=12 is deliberately
    # NOT a multiple of the batch tile, exercising the ragged last grid block
    # (padded rows only touch their own masked output rows).
    B, S, H, D = 12, 8, 128, 128

    # "Pre-embedded" context / target utterances (stand-in for tokenized text), bf16.
    context_x = jax.random.normal(k_ctx, (B, S, H), dtype=jnp.float32).astype(jnp.bfloat16)
    target_x = jax.random.normal(k_tgt, (B, S, H), dtype=jnp.float32).astype(jnp.bfloat16)

    # Deterministic encoder parameters (synthetic, not a checkpoint).
    w = (jax.random.normal(k_w, (H, D), dtype=jnp.float32) * 0.05).astype(jnp.bfloat16)
    b = jax.random.normal(k_b, (1, D), dtype=jnp.float32) * 0.01

    ctx_enc, tgt_enc = simplified_pairwise_forward(context_x, target_x, w, b)
    jax.block_until_ready(ctx_enc)
    jax.block_until_ready(tgt_enc)

    # Pure-JAX reference with the same precision split (f32 pool, bf16 MXU, f32 acc).
    def ref_encode(x):
        pooled = jnp.sum(x.astype(jnp.float32), axis=1) * (1.0 / S)
        return jnp.dot(pooled.astype(jnp.bfloat16), w,
                       preferred_element_type=jnp.float32) + b

    assert ctx_enc.shape == (B, D) and tgt_enc.shape == (B, D)
    assert jnp.allclose(ctx_enc, ref_encode(context_x), atol=1e-2, rtol=1e-2)
    assert jnp.allclose(tgt_enc, ref_encode(target_x), atol=1e-2, rtol=1e-2)

    print("KERNEL_OK")
</pallas_src>

<mosaic_0001>
module attributes {stable_mosaic.version = 11 : i64} {
  func.func @_encoder_kernel(%arg0: i32, %arg1: memref<8x8x128xbf16, #tpu.memory_space<vmem>>, %arg2: memref<128x128xbf16, #tpu.memory_space<vmem>>, %arg3: memref<1x128xf32, #tpu.memory_space<vmem>>, %arg4: memref<8x128xf32, #tpu.memory_space<vmem>>) attributes {dimension_semantics = [#tpu.dimension_semantics<parallel>], iteration_bounds = array<i64: 2>, scalar_prefetch = 0 : i64, scratch_operands = 0 : i64, tpu.core_type = #tpu.core_type<tc>, window_params = [{transform_indices = @transform_0, window_bounds = array<i64: 8, 8, 128>}, {pipeline_mode = #tpu.pipeline_mode<synchronous>, transform_indices = @transform_1, window_bounds = array<i64: 128, 128>}, {pipeline_mode = #tpu.pipeline_mode<synchronous>, transform_indices = @transform_2, window_bounds = array<i64: 1, 128>}, {transform_indices = @transform_3, window_bounds = array<i64: 8, 128>}]} {
    %c0 = arith.constant 0 : index
    %c0_0 = arith.constant 0 : index
    %c0_1 = arith.constant 0 : index
    %0 = vector.load %arg1[%c0, %c0_0, %c0_1] : memref<8x8x128xbf16, #tpu.memory_space<vmem>>, vector<8x8x128xbf16>
    %1 = arith.extf %0 : vector<8x8x128xbf16> to vector<8x8x128xf32>
    %cst = arith.constant dense<0.000000e+00> : vector<8x128xf32>
    %2 = vector.multi_reduction <add>, %1, %cst [1] : vector<8x8x128xf32> to vector<8x128xf32>
    %cst_2 = arith.constant 1.250000e-01 : f32
    %3 = vector.broadcast %cst_2 : f32 to vector<8x128xf32>
    %4 = arith.mulf %2, %3 : vector<8x128xf32>
    %5 = arith.truncf %4 : vector<8x128xf32> to vector<8x128xbf16>
    %c0_3 = arith.constant 0 : index
    %c0_4 = arith.constant 0 : index
    %6 = vector.load %arg2[%c0_3, %c0_4] : memref<128x128xbf16, #tpu.memory_space<vmem>>, vector<128x128xbf16>
    %cst_5 = arith.constant dense<0.000000e+00> : vector<8x128xf32>
    %7 = tpu.matmul %5, %6, %cst_5 {dimension_numbers = #tpu.dot_dimension_numbers<[1], [0], [0], [1], [0, 0, 1, 1], [], []>} : vector<8x128xbf16>, vector<128x128xbf16>, vector<8x128xf32> -> vector<8x128xf32>
    %c0_6 = arith.constant 0 : index
    %c0_7 = arith.constant 0 : index
    %8 = vector.load %arg3[%c0_6, %c0_7] : memref<1x128xf32, #tpu.memory_space<vmem>>, vector<1x128xf32>
    %9 = vector.broadcast %8 : vector<1x128xf32> to vector<8x128xf32>
    %10 = arith.addf %7, %9 : vector<8x128xf32>
    %c0_8 = arith.constant 0 : index
    %c0_9 = arith.constant 0 : index
    %11 = vector.load %arg4[%c0_8, %c0_9] : memref<8x128xf32, #tpu.memory_space<vmem>>, vector<8x128xf32>
    tpu.vector_store %arg4[%c0_8, %c0_9], %10 {strides = array<i32>} : memref<8x128xf32, #tpu.memory_space<vmem>>, vector<8x128xf32>,
    return
  }
  func.func @transform_0(%arg0: i32) -> (i32, i32, i32) {
    %c0_i32 = arith.constant 0 : i32
    %c0_i32_0 = arith.constant 0 : i32
    %c0_i32_1 = arith.constant 0 : i32
    return %arg0, %c0_i32, %c0_i32_0 : i32, i32, i32
  }
  func.func @transform_1(%arg0: i32) -> (i32, i32) {
    %c0_i32 = arith.constant 0 : i32
    %c0_i32_0 = arith.constant 0 : i32
    %c0_i32_1 = arith.constant 0 : i32
    return %c0_i32, %c0_i32_0 : i32, i32
  }
  func.func @transform_2(%arg0: i32) -> (i32, i32) {
    %c0_i32 = arith.constant 0 : i32
    %c0_i32_0 = arith.constant 0 : i32
    %c0_i32_1 = arith.constant 0 : i32
    return %c0_i32, %c0_i32_0 : i32, i32
  }
  func.func @transform_3(%arg0: i32) -> (i32, i32) {
    %c0_i32 = arith.constant 0 : i32
    %c0_i32_0 = arith.constant 0 : i32
    return %arg0, %c0_i32 : i32, i32
  }
}

</mosaic_0001>

<bundles_post_ra>
// kernel: tpu_custom_call.1
= control target key start
LH: loop header
LB: loop body
LE: loop exit
PB: predicated region body
PF: predicated region fallthrough
CT: control target
= control target key end

     0   :  { %8 = vsyncpa [#allocation3], 0  ;;  %s1046_s0 = inlined_call_operand.hbm [shape: bf16[12,8,128], index: 0, kind: input, shape index: {}]   ;;  %s1047_s1 = inlined_call_operand.hbm [shape: bf16[128,128], index: 1, kind: input, shape index: {}]   ;;  %s1048_s2 = inlined_call_operand.vmem [shape: f32[1,128], index: 2, kind: input, shape index: {}]   ;;  %s1049_s3 = inlined_call_operand.hbm [shape: f32[12,128], index: 3, kind: output, shape index: {}]  }
   0x1   :  { %10 = vsyncpa [#allocation3 + $0x1], 0 }
   0x2   :  { %11 = vsyncpa [#allocation6], 0 }
   0x3   :  { %12 = vsyncpa [#allocation4], 0 }
   0x4   :  { %14 = vsyncpa [#allocation4 + $0x1], 0  ;;  %s833_s12 = smov 0   ;;  %s835_s13 = smov 0  }
   0x5   :  { %s837_s14 = smov 0   ;;  %s839_s15 = smov 0  }
   0x6 LB: > { %s854_s16 = sadd.s32 4294967295, %s802_s15   ;;  %s534_s17 = sadd.s32 4294967294, %s802_s15   ;;  %s802_s15 = sphi %s839_s15, %s1070_s15   ;;  %s798_s14 = sphi %s837_s14, %s1069_s14   ;;  %s794_s13 = sphi %s835_s13, %s1068_s13   ;;  %s790_s12 = sphi %s833_s12, %s1067_s12  }
   0x7   : > { %s858_s18 = sadd.s32 1, %s802_s15   ;;  %s27_s19 = sadd.s32 1, %s798_s14 }
   0x8   : > { %s24_s20 = ssub.s32 %s802_s15, %s858_s18  ;;  %p34_p0 = scmp.ne.s32.totalorder %s798_s14, %s794_s13 }
   0x9   : > { %p25_p1 = scmp.eq.s32.totalorder %s24_s20, 0  ;;  %p35_p2 = scmp.eq.s32.totalorder %s802_s15, 0 }
   0xa   : > { %p40_p3 = scmp.ne.s32.totalorder %s794_s13, %s790_s12  ;;  %p1050_p4 = scmp.eq.s32.totalorder %s854_s16, 0 }
   0xb   : > { %s870_s21 = scalar_select %p25_p1, %s798_s14, %s27_s19  }
   0xc   : > { %p872_p5 = por %p35_p2, %p34_p0  ;;  %p878_p6 = por %p1050_p4, %p40_p3 }
   0xd   : > { %p106_p7 = scmp.eq.s32.totalorder %s854_s16, 1  ;;  %p112_p8 = scmp.eq.s32.totalorder %s534_s17, 1 }
   0xe   : > { %s1054_s22 = scalar_select %p872_p5, 1, 0 }
   0xf   : > { %s1055_s23 = scalar_select %p878_p6, 1, 0 }
  0x10   : > { %p535_p9 = scmp.ge.s32.totalorder %s802_s15, 1  ;;  %p119_p10 = scmp.lt.s32.totalorder %s802_s15, 3 }
  0x11   : > { %p885_p11 = por %p106_p7, %p34_p0  ;;  %p889_p12 = por %p112_p8, %p40_p3 }
  0x12   : > { %p893_p13 = pnand %p535_p9, %p119_p10  ;;  %s804_s27 = smov [#allocation5]  }
  0x13   : > { %s1056_s24 = scalar_select %p885_p11, 1, 0 }
  0x14   : > { %s1057_s25 = scalar_select %p889_p12, 1, 0 }
  0x15   : > { %s1058_s26 = scalar_select %p893_p13, 1, 0 }
  0x16   : > { %p618_p1 = pneg %p893_p13  ;;  %s131_s28 = sshll.u32 %s804_s27, 4  ;;  %s132_s28 = int_to_ptr.vmem [resolvable:$true] %s131_s28 }
  0x17   : > { %s676_s5 = scalar_lea.hbm %s1047_s1, 1024 }
  0x18   : > { %p901_p2 = pnand %p618_p1, %p1050_p4  ;;  %p677_p0 = scmp.ne.s32.totalorder %s1047_s1, %s676_s5 }
  0x19   : > { %p683_p9 = scmp.lt.u32.totalorder %s676_s5, %s1047_s1 }
  0x1a   : > { %p678_p3 = pneg %p901_p2 }
  0x1c   : > { %p679_p7 = pnand %p678_p3, %p677_p0 }
  0x1e   : > { %p680_p8 = pneg %p679_p7 }
  0x20   : > { %p685_p10 = pnand %p683_p9, %p680_p8 }
  0x22   : > { %688 = shalt.err (!%p685_p10)
}
  0x23   : > { %s689_s10 = scalar_lea.vmem %s132_s28, 1024  ;;  %p697_p11 = scmp.lt.s32.totalorder %s132_s28, %s132_s28 }
  0x24   : > { %p690_p1 = scmp.ne.s32.totalorder %s132_s28, %s689_s10  ;;  %p698_p6 = scmp.lt.s32.totalorder %s689_s10, %s689_s10 }
  0x26   : > { %p692_p4 = pnand %p690_p1, %p678_p3  ;;  %p699_p13 = por %p698_p6, %p697_p11 }
  0x28   : > { %p693_p12 = pneg %p692_p4 }
  0x2a   : > { %p700_p5 = pnand %p699_p13, %p693_p12 }
  0x2c   : > { %703 = shalt.err (!%p700_p5)
}
  0x2d   : > { %s805_s11 = smov 64   ;;  %s806_s17 = smov 4  }
  0x2e   : > { %621 = dma.hbm_to_vmem [thread:$0]  (!%p901_p2), %s1047_s1, 1024, %s132_s28, [#allocation6], %s805_s11, %s805_s11, %s806_s17  }
  0x2f   : > { %p537_p0 = scmp.ge.s32.totalorder %s802_s15, 2 }
  0x30   : > { %p1060_p4 = scmp.ne.s32.totalorder (!%p537_p0), %s1054_s22, 0 }
  0x31   : > { %144 = sbr.rel (%p537_p0) target bundleno = 91 (0x5b), region = 24 }
  0x38   : > { %147 = sbr.rel (!%p1060_p4) target bundleno = 91 (0x5b), region = 28  ;;  %s148_s27 = sand.u32 (%p1060_p4), 1, %s798_s14  }
  0x39   : > { %s539_s30 = sshll.u32 (%p1060_p4), %s802_s15, 3  ;;  %s538_s4 = sshll.u32 (%p1060_p4), %s148_s27, 5 }
  0x3a   : > { %s154_s5 = ssub.s32 (%p1060_p4), 12, %s539_s30  ;;  %s931_s6 = scalar_lea.sflag (%p1060_p4), [#allocation3], %s148_s27 }
  0x3b   : > { %p155_p5 = scmp.lt.s32.totalorder (%p1060_p4), %s154_s5, 8  ;;  %s152_s7 = scalar_lea.vmem (%p1060_p4), [#allocation2], %s538_s4 }
  0x3f   : > { %s1072_s5 = smov (!%p155_p5, %s154_s5), 8 }
  0x40   : > { %s928_s29 = sshll.u32 %s1072_s5, 6 }
  0x41   : > { %s159_s28 = ssub.s32 512, %s928_s29 }
  0x42   : > { %160 = vsyncadd %s931_s6, %s159_s28  ;;  %p541_p6 = scmp.ne.s32.totalorder %s928_s29, 0  ;;  %s562_s22 = sshll.u32 %s802_s15, 9 }
  0x43   : > { %s939_s10 = scalar_lea.hbm %s1046_s0, %s562_s22  ;;  %s165_s11 = sshll.u32 %s152_s7, 4  ;;  %s941_s11 = int_to_ptr.vmem [resolvable:$true] %s165_s11 }
  0x44   : > { %s704_s17 = scalar_lea.hbm %s939_s10, %s928_s29  ;;  %s708_s27 = scalar_lea.hbm %s1046_s0, 768 }
  0x45   : > { %p705_p11 = scmp.ne.s32.totalorder %s939_s10, %s704_s17  ;;  %p709_p2 = scmp.lt.u32.totalorder %s939_s10, %s1046_s0 }
  0x46   : > { %p710_p3 = scmp.lt.u32.totalorder %s708_s27, %s704_s17  ;;  %p712_p8 = scmp.lt.u32.totalorder %s704_s17, %s939_s10 }
  0x47   : > { %p706_p12 = pnand %p705_p11, %p541_p6 }
  0x48   : > { %p711_p7 = por %p710_p3, %p709_p2 }
  0x49   : > { %p707_p13 = pneg %p706_p12 }
  0x4a   : > { %p713_p9 = por %p712_p8, %p711_p7 }
  0x4c   : > { %p714_p10 = pnand %p713_p9, %p707_p13 }
  0x4e   : > { %717 = shalt.err (!%p714_p10)
}
  0x4f   : > { %s718_s5 = scalar_lea.vmem %s941_s11, %s928_s29  ;;  %s807_s28 = smov [#allocation2]  }
  0x50   : > { %p719_p1 = scmp.ne.s32.totalorder %s941_s11, %s718_s5  ;;  %s722_s7 = sshll.u32 %s807_s28, 4  ;;  %s723_s7 = int_to_ptr.vmem [resolvable:$false] %s722_s7 }
  0x51   : > { %s724_s22 = scalar_lea.vmem %s723_s7, 1024  ;;  %p725_p11 = scmp.lt.s32.totalorder %s941_s11, %s723_s7 }
  0x52   : > { %p720_p4 = pnand %p719_p1, %p541_p6  ;;  %p726_p12 = scmp.lt.s32.totalorder %s724_s22, %s718_s5 }
  0x54   : > { %p721_p5 = pneg %p720_p4  ;;  %p727_p2 = por %p726_p12, %p725_p11 }
  0x56   : > { %p728_p3 = pnand %p727_p2, %p721_p5 }
  0x58   : > { %731 = shalt.err (!%p728_p3)
}
  0x59   : > { %s808_s8 = smov 64   ;;  %s809_s9 = smov 4  }
  0x5a   : > { %171 = dma.hbm_to_vmem [thread:$0]  (%p541_p6), %s939_s10, %s928_s29, %s941_s11, %s931_s6, %s808_s8, %s808_s8, %s809_s9  }
  0x5b PF: > { %p1061_p13 = scmp.ne.s32.totalorder %s1058_s26, 0 }
  0x5c   : > { %s971_s17 = sand.u32 (!%p1061_p13), 1, %s794_s13   ;;  %p1062_p7 = scmp.ne.s32.totalorder (!%p1061_p13), %s1055_s23, 0 }
  0x5d   : > { %177 = sbr.rel (%p1061_p13) target bundleno = 365 (0x16d), region = 32  ;;  %s546_s19 = sshll.u32 (!%p1061_p13), %s971_s17, 5 }
  0x5e   : > { %s180_s20 = scalar_lea.sflag (!%p1061_p13), [#allocation3], %s971_s17  ;;  %s183_s27 = scalar_lea.vmem (!%p1061_p13), [#allocation2], %s546_s19 }
  0x64   : > { %777 = dma.done.wait (%p1062_p7), %s180_s20, 512  }
  0x65   : > { %779 = vsyncadd (%p1062_p7), %s180_s20, 4294966784  ;;  %p1063_p6 = scmp.eq.s32.totalorder %s854_s16, 0 }
  0x67   : > { %781 = dma.done.wait (%p1063_p6), [#allocation6], 1024   ;;  %p1064_p8 = pmov %p1063_p6 }
  0x68   : > { %v810_v0 = vmov 0.0   ;;  %vm811_vm0 = vmmov 0   ;;  %v668_v1 = vld [vmem:[#allocation5] sm:$0xff]   ;;  %v669_v2 = vld [vmem:[#allocation5 + $0x8] sm:$0xff]   ;;  %v670_v3 = vld [vmem:[#allocation5 + $0x10] sm:$0xff]   ;;  %vm335_vm1 = vcmask 1041409  }
  0x69   : > { %783 = vsyncadd (%p1064_p8), [#allocation6], 4294966272  ;;  %591 = vmatprep.subr.bf16.mxu0 %v810_v0  ;;  %607 = vmatprep.mubr.msk.bf16.mxu0 %vm811_vm0, %v810_v0  ;;  %v564_v4 = vld [vmem:[%s183_s27] sm:$0xff]   ;;  %v579_v5 = vld [vmem:[%s183_s27 + $0x8] sm:$0xff]   ;;  %vm337_vm2 = vcmask 1042434   ;;  %vm339_vm3 = vcmask 1043459  }
  0x6a   : > { %592 = vmatpush3.bf16.msra.mxu0 %v668_v1  ;;  %v580_v6 = vld [vmem:[%s183_s27 + $0x10] sm:$0xff]   ;;  %v565_v7 = vunpack.c.l.bf16 %v564_v4  ;;  %v566_v8 = vunpack.c.h.bf16 %v564_v4  ;;  %v569_v9 = vunpack.c.l.bf16 %v579_v5  ;;  %v570_v10 = vunpack.c.h.bf16 %v579_v5  ;;  %v581_v11 = vld [vmem:[%s183_s27 + $0x18] sm:$0xff]   ;;  %v672_v29 = vld [vmem:[#allocation5 + $0x20] sm:$0xff]   ;;  %s548_s23 = sshll.u32 %s971_s17, 3  ;;  %s559_s6 = sshll.u32 %s854_s16, 7 }
  0x6b   : > { %593 = vmatprep.subr.bf16.mxu0 %v810_v0  ;;  %v671_v12 = vld [vmem:[#allocation5 + $0x18] sm:$0xff]   ;;  %v573_v13 = vunpack.c.l.bf16 %v580_v6  ;;  %v574_v14 = vunpack.c.h.bf16 %v580_v6  ;;  %v577_v15 = vunpack.c.l.bf16 %v581_v11  ;;  %v578_v16 = vunpack.c.h.bf16 %v581_v11  ;;  %v673_v46 = vld [vmem:[#allocation5 + $0x28] sm:$0xff]   ;;  %v674_v63 = vld [vmem:[#allocation5 + $0x30] sm:$0xff]   ;;  %s209_s10 = scalar_lea.vmem [#allocation7], %s548_s23  ;;  %s1002_s5 = scalar_lea.hbm %s1049_s3, %s559_s6 }
  0x6c   : > { %v232_v17 = vrot.slane %v565_v7, 4  ;;  %v238_v18 = vrot.slane %v566_v8, 4  ;;  %v244_v19 = vrot.slane %v569_v9, 4  ;;  %v250_v20 = vrot.slane %v570_v10, 4  ;;  %s454_s11 = sshll.u32 %s209_s10, 4  ;;  %s441_s28 = scalar_lea.sflag [#allocation4], %s971_s17  ;;  %s1004_s11 = int_to_ptr.vmem [resolvable:$true] %s454_s11 }
  0x6d   : > { %v256_v21 = vrot.slane %v573_v13, 4  ;;  %v262_v22 = vrot.slane %v574_v14, 4  ;;  %v268_v23 = vrot.slane %v577_v15, 4  ;;  %v274_v24 = vrot.slane %v578_v16, 4  ;;  %s732_s16 = scalar_lea.vmem %s1004_s11, 128  ;;  %p1065_p10 = scmp.ne.s32.totalorder %s1056_s24, 0 }
  0x6e   : > { %594 = vmatpush3.bf16.msra.mxu0 %v669_v2  ;;  %v233_v25 = vadd.f32 %v565_v7, %v232_v17  ;;  %v239_v26 = vadd.f32 %v566_v8, %v238_v18  ;;  %v245_v27 = vadd.f32 %v569_v9, %v244_v19  ;;  %v251_v28 = vadd.f32 %v570_v10, %v250_v20  ;;  %v675_v17 = vld [vmem:[#allocation5 + $0x38] sm:$0xff]   ;;  %p733_p9 = scmp.ne.s32.totalorder %s1004_s11, %s732_s16  ;;  %s812_s7 = smov [#allocation7]  }
  0x6f   : > { %595 = vmatprep.subr.bf16.mxu0 %v810_v0  ;;  %v257_v30 = vadd.f32 %v573_v13, %v256_v21  ;;  %v263_v31 = vadd.f32 %v574_v14, %v262_v22  ;;  %v269_v32 = vadd.f32 %v577_v15, %v268_v23  ;;  %v275_v33 = vadd.f32 %v578_v16, %v274_v24  ;;  %s736_s22 = sshll.u32 %s812_s7, 4  ;;  %s737_s22 = int_to_ptr.vmem [resolvable:$false] %s736_s22 }
  0x70   : > { %v234_v34 = vrot.slane %v233_v25, 2  ;;  %v240_v35 = vrot.slane %v239_v26, 2  ;;  %v246_v36 = vrot.slane %v245_v27, 2  ;;  %v252_v37 = vrot.slane %v251_v28, 2  ;;  %p734_p1 = pnand %p733_p9, %p1065_p10  ;;  %s738_s8 = scalar_lea.vmem %s737_s22, 256 }
  0x71   : > { %v258_v38 = vrot.slane %v257_v30, 2  ;;  %v264_v39 = vrot.slane %v263_v31, 2  ;;  %v270_v40 = vrot.slane %v269_v32, 2  ;;  %v276_v41 = vrot.slane %v275_v33, 2  ;;  %p739_p5 = scmp.lt.s32.totalorder %s1004_s11, %s737_s22  ;;  %p740_p11 = scmp.lt.s32.totalorder %s738_s8, %s732_s16 }
  0x72   : > { %596 = vmatpush3.bf16.msra.mxu0 %v670_v3  ;;  %v235_v42 = vadd.f32 %v234_v34, %v233_v25  ;;  %v241_v43 = vadd.f32 %v240_v35, %v239_v26  ;;  %v247_v44 = vadd.f32 %v246_v36, %v245_v27  ;;  %v253_v45 = vadd.f32 %v252_v37, %v251_v28  ;;  %v549_v37 = vld [vmem:[%s1048_s2] ss:$0 sm:$0xff]  ;;  %p735_p4 = pneg %p734_p1 }
  0x73   : > { %597 = vmatprep.subr.bf16.mxu0 %v810_v0  ;;  %v259_v47 = vadd.f32 %v258_v38, %v257_v30  ;;  %v265_v48 = vadd.f32 %v264_v39, %v263_v31  ;;  %v271_v49 = vadd.f32 %v270_v40, %v269_v32  ;;  %v277_v50 = vadd.f32 %v276_v41, %v275_v33  ;;  %p741_p12 = por %p740_p11, %p739_p5 }
  0x74   : > { %v236_v51 = vrot.slane %v235_v42, 1  ;;  %v242_v52 = vrot.slane %v241_v43, 1  ;;  %v248_v53 = vrot.slane %v247_v44, 1  ;;  %v254_v54 = vrot.slane %v253_v45, 1 }
  0x75   : > { %v260_v55 = vrot.slane %v259_v47, 1  ;;  %v266_v56 = vrot.slane %v265_v48, 1  ;;  %v272_v57 = vrot.slane %v271_v49, 1  ;;  %v278_v58 = vrot.slane %v277_v50, 1  ;;  %p742_p2 = pnand %p741_p12, %p735_p4 }
  0x76   : > { %598 = vmatpush3.bf16.msra.mxu0 %v671_v12  ;;  %v237_v59 = vadd.f32 %v236_v51, %v235_v42  ;;  %v243_v60 = vadd.f32 %v242_v52, %v241_v43  ;;  %v249_v61 = vadd.f32 %v248_v53, %v247_v44  ;;  %v255_v62 = vadd.f32 %v254_v54, %v253_v45 }
  0x77   : > { %599 = vmatprep.subr.bf16.mxu0 %v810_v0  ;;  %v261_v1 = vadd.f32 %v260_v55, %v259_v47  ;;  %v267_v2 = vadd.f32 %v266_v56, %v265_v48  ;;  %v273_v3 = vadd.f32 %v272_v57, %v271_v49  ;;  %v279_v4 = vadd.f32 %v278_v58, %v277_v50 }
  0x78   : > { %v280_v5 = vmul.f32 0.125, %v237_v59  ;;  %v281_v6 = vmul.f32 0.125, %v243_v60  ;;  %v282_v7 = vmul.f32 0.125, %v249_v61  ;;  %v283_v8 = vmul.f32 0.125, %v255_v62 }
  0x79   : > { %v284_v9 = vmul.f32 0.125, %v261_v1  ;;  %v285_v10 = vmul.f32 0.125, %v267_v2  ;;  %v286_v11 = vmul.f32 0.125, %v273_v3  ;;  %v287_v12 = vmul.f32 0.125, %v279_v4 }
  0x7a   : > { %600 = vmatpush3.bf16.msra.mxu0 %v672_v29  ;;  %v288_v13 = vpack.c.bf16 %v280_v5, %v280_v5  ;;  %v289_v14 = vpack.c.bf16 %v281_v6, %v281_v6  ;;  %v290_v15 = vpack.c.bf16 %v282_v7, %v282_v7  ;;  %v291_v16 = vpack.c.bf16 %v283_v8, %v283_v8 }
  0x7b   : > { %601 = vmatprep.subr.bf16.mxu0 %v810_v0  ;;  %v292_v18 = vpack.c.bf16 %v284_v9, %v284_v9  ;;  %v293_v19 = vpack.c.bf16 %v285_v10, %v285_v10  ;;  %v294_v20 = vpack.c.bf16 %v286_v11, %v286_v11  ;;  %v295_v21 = vpack.c.bf16 %v287_v12, %v287_v12 }
  0x7c   : > { %v327_v22 = vunpack.c.l.b16 %v288_v13  ;;  %v328_v23 = vunpack.c.l.b16 %v289_v14  ;;  %v329_v24 = vunpack.c.l.b16 %v290_v15  ;;  %v330_v25 = vunpack.c.l.b16 %v291_v16 }
  0x7d   : > { %v331_v26 = vunpack.c.l.b16 %v292_v18  ;;  %v332_v27 = vunpack.c.l.b16 %v293_v19  ;;  %vm341_vm4 = vcmask 1044484   ;;  %v333_v29 = vunpack.c.l.b16 %v294_v20 }
  0x7e   : > { %602 = vmatpush3.bf16.msra.mxu0 %v673_v46  ;;  %v336_v28 = vsel %vm335_vm1, %v328_v23, %v327_v22  ;;  %vm343_vm5 = vcmask 1045509   ;;  %v334_v31 = vunpack.c.l.b16 %v295_v21  ;;  %vm345_vm6 = vcmask 1046534  }
  0x7f   : > { %603 = vmatprep.subr.bf16.mxu0 %v810_v0  ;;  %v338_v30 = vsel %vm337_vm2, %v329_v24, %v336_v28  ;;  %vm347_vm7 = vcmask 1047559  }
  0x80   : > { %v340_v32 = vsel %vm339_vm3, %v330_v25, %v338_v30 }
  0x82   : > { %604 = vmatpush3.bf16.msra.mxu0 %v674_v63 }
  0x83   : > { %605 = vmatprep.subr.bf16.mxu0 %v810_v0  ;;  %v342_v0 = vsel %vm341_vm4, %v331_v26, %v340_v32 }
  0x84   : > { %v344_v33 = vsel %vm343_vm5, %v332_v27, %v342_v0 }
  0x85   : > { %v346_v34 = vsel %vm345_vm6, %v333_v29, %v344_v33 }
  0x86   : > { %606 = vmatpush3.bf16.msra.mxu0 %v675_v17  ;;  %v348_v35 = vsel %vm347_vm7, %v334_v31, %v346_v34 }
  0x87   : > { %v349_v36 = vpack.c.b16 %v348_v35, %v348_v35 }
  0x89   : > { %608 = vmatmul.mubr.bf16.vlgmr.msra.gmra.mrb[0].mxu0 %v349_v36 }
 0x15c   : > { %v433_v38 = vpop.f32.mrb[0].mxu0 }
 0x15d   : > { %v434_v39 = vadd.f32 %v549_v37, %v433_v38  ;;  %v609_v40 = vpop.f32.mrb[1].mxu0 }
 0x15e   : > { %v436_v41 = vpop.f32.mrb[2].mxu0 }
 0x15f   : > { %439 = vst [vmem:[%s209_s10] sm:$0xff] %v434_v39  ;;  %v610_v42 = vpop.f32.mrb[3].mxu0 }
 0x160   : > { %745 = shalt.err (!%p742_p2)
}
 0x161   : > { %s746_s9 = scalar_lea.hbm %s1002_s5, 128  ;;  %s750_s20 = scalar_lea.hbm %s1049_s3, 256 }
 0x162   : > { %p747_p3 = scmp.ne.s32.totalorder %s1002_s5, %s746_s9  ;;  %p751_p6 = scmp.lt.u32.totalorder %s1002_s5, %s1049_s3 }
 0x163   : > { %p752_p8 = scmp.lt.u32.totalorder %s750_s20, %s746_s9  ;;  %p754_p1 = scmp.lt.u32.totalorder %s746_s9, %s1002_s5 }
 0x164   : > { %p748_p13 = pnand %p747_p3, %p1065_p10 }
 0x165   : > { %p753_p9 = por %p752_p8, %p751_p6 }
 0x166   : > { %p749_p7 = pneg %p748_p13 }
 0x167   : > { %p755_p4 = por %p754_p1, %p753_p9 }
 0x169   : > { %p756_p5 = pnand %p755_p4, %p749_p7 }
 0x16b   : > { %759 = shalt.err (!%p756_p5)
}
 0x16c   : > { %616 = dma.vmem_to_hbm [thread:$0]  (%p1065_p10), %s1004_s11, 128, %s1002_s5, %s441_s28  }
 0x16d PF: > { %s466_s26 = sand.u32 1, %s790_s12   ;;  %p1066_p11 = scmp.ne.s32.totalorder %s1057_s25, 0 }
 0x16e   : > { %s467_s29 = scalar_lea.sflag [#allocation4], %s466_s26 }
 0x16f   : > { %p623_p12 = pnand %p537_p0, %p1066_p11 }
 0x171   : > { %785 = dma.done.wait (!%p623_p12), %s467_s29, 128  }
 0x172   : > { %787 = vsyncadd (!%p623_p12), %s467_s29, 4294967168  ;;  %p17_p2 = scmp.ge.s32.totalorder %s858_s18, 4   ;;  %s1067_s12 = smov %s794_s13 }
 0x173   : > { %s1068_s13 = smov %s798_s14  ;;  %s1069_s14 = smov %s870_s21 }
 0x174   : > { %s1070_s15 = smov %s858_s18  ;;  %19 = sbr.rel (!%p17_p2) target bundleno = 6 (0x6), region = 81 }
 0x17b   :  { %472 = vsyncpa [#allocation3], 1 }
 0x17c   :  { %474 = vsyncpa [#allocation3 + $0x1], 1 }
 0x17d   :  { %475 = vsyncpa [#allocation6], 1 }
 0x17e   :  { %476 = vsyncpa [#allocation4], 1 }
 0x17f   :  { %478 = vsyncpa [#allocation4 + $0x1], 1 }

</bundles_post_ra>
